<compile_context>
chip_gen: v7x
topology: tpu7x:2x2x1
jax: 0.10.0
libtpu: 0.0.40
codegen_flags: <defaults>
</compile_context>

<pallas_src>
import numpy as np
import jax
import jax.numpy as jnp
from jax.experimental import pallas as pl
from jax.experimental.pallas import tpu as pltpu

SAMPLE_RATE = 16000
N_FFT = 400
WIN_LEN = 400          # 25 ms
HOP = 160              # 10 ms
N_FREQS = N_FFT // 2 + 1   # 201 (onesided)
N_MELS = 80
F_MIN, F_MAX = 0.0, SAMPLE_RATE / 2.0
AMIN = 1e-10
TOP_DB = 80.0

# TPU-friendly padded sizes (all matmul dims tile-aligned for bf16/f32)
WIN_PAD = 512          # padded frame length (K of the DFT matmul)
FREQ_PAD = 256         # padded onesided-spectrum length
MEL_PAD = 128          # padded mel count (lane-dense output)


def _hamming_periodic(n):
    t = np.arange(n)
    return 0.54 - 0.46 * np.cos(2.0 * np.pi * t / n)   # torch.hamming_window(periodic=True)


def _dft_matrix():
    """Fused windowed real|imag DFT matrix, zero-padded to (WIN_PAD, 2*FREQ_PAD), bf16."""
    t = np.arange(WIN_LEN)[:, None].astype(np.float64)
    k = np.arange(N_FREQS)[None, :].astype(np.float64)
    ang = 2.0 * np.pi * t * k / N_FFT
    w = _hamming_periodic(WIN_LEN)[:, None]
    wr = w * np.cos(ang)
    wi = -w * np.sin(ang)
    W = np.zeros((WIN_PAD, 2 * FREQ_PAD), np.float32)
    W[:WIN_LEN, :N_FREQS] = wr
    W[:WIN_LEN, FREQ_PAD:FREQ_PAD + N_FREQS] = wi
    return jnp.asarray(W, dtype=jnp.bfloat16)


def _mel_matrix():
    """SpeechBrain-style triangular mel filterbank, zero-padded to (FREQ_PAD, MEL_PAD), f32."""
    def to_mel(hz): return 2595.0 * np.log10(1.0 + hz / 700.0)
    def to_hz(mel): return 700.0 * (10.0 ** (mel / 2595.0) - 1.0)
    mel = np.linspace(to_mel(F_MIN), to_mel(F_MAX), N_MELS + 2)
    hz = to_hz(mel)
    band = (hz[1:] - hz[:-1])[:-1]             # (n_mels,)
    f_central = hz[1:-1]                       # (n_mels,)
    all_freqs = np.linspace(0.0, SAMPLE_RATE // 2, N_FREQS)   # (n_freqs,)
    slope = (all_freqs[None, :] - f_central[:, None]) / band[:, None]
    fbank = np.maximum(0.0, np.minimum(slope + 1.0, -slope + 1.0)).T   # (n_freqs, n_mels)
    M = np.zeros((FREQ_PAD, MEL_PAD), np.float32)
    M[:N_FREQS, :N_MELS] = fbank.astype(np.float32)
    return jnp.asarray(M)


def fbank_kernel(frames_ref, w_ref, mel_ref, out_ref):
    """One tile of frames -> log-mel energies (dB, before top_db clamp)."""
    x = frames_ref[...]                                                  # (TF, WIN_PAD) bf16
    # single MXU pass: [Re | Im] = x @ [Wr | Wi]  (f32 accumulation)
    y = jnp.dot(x, w_ref[...], preferred_element_type=jnp.float32)      # (TF, 2*FREQ_PAD)
    re = y[:, :FREQ_PAD]
    im = y[:, FREQ_PAD:]
    power = re * re + im * im                                            # |X|^2  (f32)
    mel = jnp.dot(power, mel_ref[...], preferred_element_type=jnp.float32)   # (TF, MEL_PAD)
    out_ref[...] = 10.0 * jnp.log10(jnp.maximum(mel, AMIN))


def ecapa_frontend(pcm):
    pcm = jnp.asarray(pcm, jnp.float32)
    if pcm.ndim == 1:
        pcm = pcm[None, :]
    B, T = pcm.shape

    # center padding (constant zeros), as in speechbrain STFT
    pad = N_FFT // 2
    x = jnp.pad(pcm, ((0, 0), (pad, pad)))
    n_frames = 1 + (T + 2 * pad - N_FFT) // HOP

    # frame extraction (glue)
    idx = jnp.arange(n_frames)[:, None] * HOP + jnp.arange(WIN_LEN)[None, :]
    frames = x[:, idx].reshape(B * n_frames, WIN_LEN).astype(jnp.bfloat16)

    rows = B * n_frames
    # Adaptive frames-per-tile: fill the MXU M dimension when there is enough work,
    # keep >= 2 grid steps for long inputs (v7x megacore), single tile for short clips.
    if rows >= 512:
        TF = 256
    elif rows >= 128:
        TF = 128
    else:
        TF = ((rows + 7) // 8) * 8
    rows_pad = ((rows + TF - 1) // TF) * TF

    # single fused pad (rows -> rows_pad, WIN_LEN -> WIN_PAD); padded region is zero
    frames_p = jnp.pad(frames, ((0, rows_pad - rows), (0, WIN_PAD - WIN_LEN)))

    W = _dft_matrix()       # (WIN_PAD, 2*FREQ_PAD) bf16
    M = _mel_matrix()       # (FREQ_PAD, MEL_PAD)   f32

    flops = rows_pad * (2 * WIN_PAD * (2 * FREQ_PAD)     # fused DFT matmul
                        + 3 * FREQ_PAD                   # power spectrum
                        + 2 * FREQ_PAD * MEL_PAD)        # mel matmul
    bytes_accessed = (rows_pad * WIN_PAD * 2             # frames (bf16)
                      + WIN_PAD * 2 * FREQ_PAD * 2       # DFT matrix (bf16)
                      + FREQ_PAD * MEL_PAD * 4           # mel matrix (f32)
                      + rows_pad * MEL_PAD * 4)          # output (f32)
    cost = pl.CostEstimate(flops=int(flops),
                           transcendentals=int(rows_pad * MEL_PAD),
                           bytes_accessed=int(bytes_accessed))

    out = pl.pallas_call(
        fbank_kernel,
        out_shape=jax.ShapeDtypeStruct((rows_pad, MEL_PAD), jnp.float32),
        grid_spec=pltpu.PrefetchScalarGridSpec(
            num_scalar_prefetch=0,
            grid=(rows_pad // TF,),
            in_specs=[
                pl.BlockSpec((TF, WIN_PAD), lambda i: (i, 0)),
                pl.BlockSpec((WIN_PAD, 2 * FREQ_PAD), lambda i: (0, 0)),
                pl.BlockSpec((FREQ_PAD, MEL_PAD), lambda i: (0, 0)),
            ],
            out_specs=pl.BlockSpec((TF, MEL_PAD), lambda i: (i, 0)),
        ),
        compiler_params=pltpu.CompilerParams(
            dimension_semantics=("parallel",)),
        cost_estimate=cost,
    )(frames_p, W, M)

    feats = out[:rows, :N_MELS].reshape(B, n_frames, N_MELS)

    # top_db clamp per utterance (speechbrain Filterbank._amplitude_to_DB;
    # db_multiplier = log10(max(amin, ref=1.0)) = 0, so no reference offset)
    max_db = jnp.max(feats, axis=(-2, -1), keepdims=True)
    feats = jnp.maximum(feats, max_db - TOP_DB)

    # matches torch .squeeze(0)
    return feats[0] if B == 1 else feats


if __name__ == "__main__":
    # TODO(synk): pretrained HuggingFace checkpoint download is replaced by the
    # analytically defined Hamming/DFT/mel matrices above (the Fbank frontend has
    # no learned weights, so this is the exact synthetic equivalent).
    key = jax.random.PRNGKey(0)
    pcm = jax.random.normal(key, (1, 3200), dtype=jnp.float32)   # 0.2 s @ 16 kHz
    feats = ecapa_frontend(pcm)
    feats = jax.block_until_ready(feats)
    assert feats.shape == (1 + 3200 // HOP, N_MELS), feats.shape   # (21, 80)
    assert bool(jnp.all(jnp.isfinite(feats)))
    print("KERNEL_OK")
</pallas_src>

<mosaic_0001>
module attributes {stable_mosaic.version = 11 : i64} {
  func.func @fbank_kernel(%arg0: i32, %arg1: memref<24x512xbf16, #tpu.memory_space<vmem>>, %arg2: memref<512x512xbf16, #tpu.memory_space<vmem>>, %arg3: memref<256x128xf32, #tpu.memory_space<vmem>>, %arg4: memref<24x128xf32, #tpu.memory_space<vmem>>) attributes {dimension_semantics = [#tpu.dimension_semantics<parallel>], iteration_bounds = array<i64: 1>, scalar_prefetch = 0 : i64, scratch_operands = 0 : i64, tpu.core_type = #tpu.core_type<tc>, window_params = [{transform_indices = @transform_0, window_bounds = array<i64: 24, 512>}, {pipeline_mode = #tpu.pipeline_mode<synchronous>, transform_indices = @transform_1, window_bounds = array<i64: 512, 512>}, {pipeline_mode = #tpu.pipeline_mode<synchronous>, transform_indices = @transform_2, window_bounds = array<i64: 256, 128>}, {transform_indices = @transform_3, window_bounds = array<i64: 24, 128>}]} {
    %c0 = arith.constant 0 : index
    %c0_0 = arith.constant 0 : index
    %0 = vector.load %arg1[%c0, %c0_0] : memref<24x512xbf16, #tpu.memory_space<vmem>>, vector<24x512xbf16>
    %c0_1 = arith.constant 0 : index
    %c0_2 = arith.constant 0 : index
    %1 = vector.load %arg2[%c0_1, %c0_2] : memref<512x512xbf16, #tpu.memory_space<vmem>>, vector<512x512xbf16>
    %cst = arith.constant dense<0.000000e+00> : vector<24x512xf32>
    %2 = tpu.matmul %0, %1, %cst {dimension_numbers = #tpu.dot_dimension_numbers<[1], [0], [0], [1], [0, 0, 1, 1], [], []>} : vector<24x512xbf16>, vector<512x512xbf16>, vector<24x512xf32> -> vector<24x512xf32>
    %3 = vector.extract_strided_slice %2 {offsets = [0, 0], sizes = [24, 256], strides = [1, 1]} : vector<24x512xf32> to vector<24x256xf32>
    %4 = vector.extract_strided_slice %2 {offsets = [0, 256], sizes = [24, 256], strides = [1, 1]} : vector<24x512xf32> to vector<24x256xf32>
    %5 = arith.mulf %3, %3 : vector<24x256xf32>
    %6 = arith.mulf %4, %4 : vector<24x256xf32>
    %7 = arith.addf %5, %6 : vector<24x256xf32>
    %c0_3 = arith.constant 0 : index
    %c0_4 = arith.constant 0 : index
    %8 = vector.load %arg3[%c0_3, %c0_4] : memref<256x128xf32, #tpu.memory_space<vmem>>, vector<256x128xf32>
    %cst_5 = arith.constant dense<0.000000e+00> : vector<24x128xf32>
    %9 = tpu.matmul %7, %8, %cst_5 {dimension_numbers = #tpu.dot_dimension_numbers<[1], [0], [0], [1], [0, 0, 1, 1], [], []>} : vector<24x256xf32>, vector<256x128xf32>, vector<24x128xf32> -> vector<24x128xf32>
    %cst_6 = arith.constant 1.000000e-10 : f32
    %10 = vector.broadcast %cst_6 : f32 to vector<24x128xf32>
    %11 = arith.maximumf %9, %10 : vector<24x128xf32>
    %12 = math.log %11 : vector<24x128xf32>
    %cst_7 = arith.constant 0.434294492 : f32
    %13 = vector.broadcast %cst_7 : f32 to vector<24x128xf32>
    %14 = arith.mulf %12, %13 : vector<24x128xf32>
    %cst_8 = arith.constant 1.000000e+01 : f32
    %15 = vector.broadcast %cst_8 : f32 to vector<24x128xf32>
    %16 = arith.mulf %15, %14 : vector<24x128xf32>
    %c0_9 = arith.constant 0 : index
    %c0_10 = arith.constant 0 : index
    %17 = vector.load %arg4[%c0_9, %c0_10] : memref<24x128xf32, #tpu.memory_space<vmem>>, vector<24x128xf32>
    tpu.vector_store %arg4[%c0_9, %c0_10], %16 {strides = array<i32>} : memref<24x128xf32, #tpu.memory_space<vmem>>, vector<24x128xf32>,
    return
  }
  func.func @transform_0(%arg0: i32) -> (i32, i32) {
    %c0_i32 = arith.constant 0 : i32
    %c0_i32_0 = arith.constant 0 : i32
    return %arg0, %c0_i32 : i32, i32
  }
  func.func @transform_1(%arg0: i32) -> (i32, i32) {
    %c0_i32 = arith.constant 0 : i32
    %c0_i32_0 = arith.constant 0 : i32
    %c0_i32_1 = arith.constant 0 : i32
    return %c0_i32, %c0_i32_0 : i32, i32
  }
  func.func @transform_2(%arg0: i32) -> (i32, i32) {
    %c0_i32 = arith.constant 0 : i32
    %c0_i32_0 = arith.constant 0 : i32
    %c0_i32_1 = arith.constant 0 : i32
    return %c0_i32, %c0_i32_0 : i32, i32
  }
  func.func @transform_3(%arg0: i32) -> (i32, i32) {
    %c0_i32 = arith.constant 0 : i32
    %c0_i32_0 = arith.constant 0 : i32
    return %arg0, %c0_i32 : i32, i32
  }
}

</mosaic_0001>

<bundles_post_ra>
// kernel: tpu_custom_call.1
= control target key start
LH: loop header
LB: loop body
LE: loop exit
PB: predicated region body
PF: predicated region fallthrough
CT: control target
= control target key end

     0   :  { %8 = vsyncpa [#allocation3], 0  ;;  %s1874_s0 = inlined_call_operand.hbm [shape: bf16[24,512], index: 0, kind: input, shape index: {}]   ;;  %s1875_s1 = inlined_call_operand.hbm [shape: bf16[512,512], index: 1, kind: input, shape index: {}]   ;;  %s1876_s2 = inlined_call_operand.hbm [shape: f32[256,128], index: 2, kind: input, shape index: {}]   ;;  %s1877_s3 = inlined_call_operand.hbm [shape: f32[24,128], index: 3, kind: output, shape index: {}]  }
   0x1   :  { %9 = vsyncpa [#allocation6], 0 }
   0x2   :  { %10 = vsyncpa [#allocation4], 0  ;;  %s1785_s12 = smov [#allocation5]   ;;  %s1786_s14 = smov [#allocation2]  }
   0x3   :  { %s28_s13 = sshll.u32 %s1785_s12, 4  ;;  %s16_s15 = sshll.u32 %s1786_s14, 4  ;;  %s29_s13 = int_to_ptr.vmem [resolvable:$true] %s28_s13  ;;  %s1813_s15 = int_to_ptr.vmem [resolvable:$true] %s16_s15 }
   0x4   :  { %s1691_s18 = scalar_lea.hbm %s1875_s1, 16384 }
   0x5   :  { %p1692_p0 = scmp.ne.s32.totalorder %s1875_s1, %s1691_s18  ;;  %p1695_p1 = scmp.lt.u32.totalorder %s1691_s18, %s1875_s1 }
   0x7   :  { %p1697_p2 = pnand %p1695_p1, %p1692_p0 }
   0x9   :  { %1700 = shalt.err (!%p1697_p2)
}
   0xa   :  { %s1701_s23 = scalar_lea.vmem %s29_s13, 16384  ;;  %p1706_p4 = scmp.lt.s32.totalorder %s29_s13, %s29_s13 }
   0xb   :  { %p1702_p3 = scmp.ne.s32.totalorder %s29_s13, %s1701_s23  ;;  %p1707_p5 = scmp.lt.s32.totalorder %s1701_s23, %s1701_s23 }
   0xd   :  { %p1708_p6 = por %p1707_p5, %p1706_p4 }
   0xf   :  { %p1709_p7 = pnand %p1708_p6, %p1702_p3 }
  0x11   :  { %1712 = shalt.err (!%p1709_p7)
}
  0x12   :  { %s1787_s24 = smov 256   ;;  %s1788_s25 = smov 16  }
  0x13   :  { %34 = dma.hbm_to_vmem [thread:$0]  %s1875_s1, 16384, %s29_s13, [#allocation6], %s1787_s24, %s1787_s24, %s1788_s25  }
  0x14   :  { %s1713_s30 = scalar_lea.hbm %s1874_s0, 768 }
  0x15   :  { %p1714_p8 = scmp.ne.s32.totalorder %s1874_s0, %s1713_s30  ;;  %p1717_p9 = scmp.lt.u32.totalorder %s1713_s30, %s1874_s0 }
  0x17   :  { %p1719_p10 = pnand %p1717_p9, %p1714_p8 }
  0x19   :  { %1722 = shalt.err (!%p1719_p10)
}
  0x1a   :  { %s1723_s8 = scalar_lea.vmem %s1813_s15, 768  ;;  %p1728_p12 = scmp.lt.s32.totalorder %s1813_s15, %s1813_s15 }
  0x1b   :  { %p1724_p11 = scmp.ne.s32.totalorder %s1813_s15, %s1723_s8  ;;  %p1729_p13 = scmp.lt.s32.totalorder %s1723_s8, %s1723_s8 }
  0x1d   :  { %p1730_p0 = por %p1729_p13, %p1728_p12 }
  0x1f   :  { %p1731_p1 = pnand %p1730_p0, %p1724_p11 }
  0x21   :  { %1734 = shalt.err (!%p1731_p1)
}
  0x22   :  { %22 = dma.hbm_to_vmem [thread:$0]  %s1874_s0, 768, %s1813_s15, [#allocation3], %s1787_s24, %s1787_s24, %s1788_s25  }
  0x23   :  { %s1789_s10 = smov [#allocation7]   ;;  %s1735_s14 = scalar_lea.hbm %s1876_s2, 4096 }
  0x24   :  { %s40_s11 = sshll.u32 %s1789_s10, 4  ;;  %p1736_p2 = scmp.ne.s32.totalorder %s1876_s2, %s1735_s14  ;;  %s41_s11 = int_to_ptr.vmem [resolvable:$true] %s40_s11 }
  0x25   :  { %p1739_p3 = scmp.lt.u32.totalorder %s1735_s14, %s1876_s2 }
  0x27   :  { %p1741_p4 = pnand %p1739_p3, %p1736_p2 }
  0x29   :  { %1744 = shalt.err (!%p1741_p4)
}
  0x2a   :  { %s1745_s20 = scalar_lea.vmem %s41_s11, 4096  ;;  %p1750_p6 = scmp.lt.s32.totalorder %s41_s11, %s41_s11 }
  0x2b   :  { %p1746_p5 = scmp.ne.s32.totalorder %s41_s11, %s1745_s20  ;;  %p1751_p7 = scmp.lt.s32.totalorder %s1745_s20, %s1745_s20 }
  0x2d   :  { %p1752_p8 = por %p1751_p7, %p1750_p6 }
  0x2f   :  { %p1753_p9 = pnand %p1752_p8, %p1746_p5 }
  0x31   :  { %1756 = shalt.err (!%p1753_p9)
}
  0x32   :  { %s1790_s0 = smov 128   ;;  %s1791_s15 = smov 8  }
  0x33   :  { %46 = dma.hbm_to_vmem [thread:$0]  %s1876_s2, 4096, %s41_s11, [#allocation6], %s1790_s0, %s1790_s0, %s1791_s15  }
  0x34   :  { %1779 = dma.done.wait [#allocation3], 768  }
  0x35   :  { %1780 = vsyncadd [#allocation3], 4294966528 }
  0x36   :  { %1781 = dma.done.wait [#allocation6], 20480  }
  0x37   :  { %1782 = vsyncadd [#allocation6], 4294946816  ;;  %v1483_v0 = vld [vmem:[#allocation5 + $0x4] ss:$16 sps:$4 sm:$0xff]   ;;  %v1485_v1 = vld [vmem:[#allocation5 + $0xc] ss:$16 sps:$4 sm:$0xff]  }
  0x38   :  { %864 = vmatprep.subr.bf16.mxu0 %v1483_v0  ;;  %v1487_v2 = vld [vmem:[#allocation5] ss:$16 sps:$4 sm:$0xff]   ;;  %v1488_v3 = vld [vmem:[#allocation5 + $0x8] ss:$16 sps:$4 sm:$0xff]   ;;  %966 = vmatprep.subr.bf16.mxu1 %v1485_v1  ;;  %v1489_v4 = vld [vmem:[#allocation5 + $0x24] ss:$16 sps:$4 sm:$0xff]  }
  0x39   :  { %865 = vmatpush1.bf16.msra.mxu0 %v1487_v2  ;;  %967 = vmatpush1.bf16.msra.mxu1 %v1488_v3  ;;  %v1491_v5 = vld [vmem:[#allocation5 + $0x2c] ss:$16 sps:$4 sm:$0xff]   ;;  %v1493_v6 = vld [vmem:[#allocation5 + $0x20] ss:$16 sps:$4 sm:$0xff]   ;;  %v1494_v7 = vld [vmem:[#allocation5 + $0x28] ss:$16 sps:$4 sm:$0xff]  }
  0x3a   :  { %866 = vmatprep.subr.bf16.mxu0 %v1489_v4  ;;  %968 = vmatprep.subr.bf16.mxu1 %v1491_v5  ;;  %v1495_v8 = vld [vmem:[#allocation5 + $0x44] ss:$16 sps:$4 sm:$0xff]   ;;  %v1497_v9 = vld [vmem:[#allocation5 + $0x4c] ss:$16 sps:$4 sm:$0xff]   ;;  %v1499_v10 = vld [vmem:[#allocation5 + $0x40] ss:$16 sps:$4 sm:$0xff]  }
  0x3b   :  { %v1500_v11 = vld [vmem:[#allocation5 + $0x48] ss:$16 sps:$4 sm:$0xff]   ;;  %v1501_v12 = vld [vmem:[#allocation5 + $0x64] ss:$16 sps:$4 sm:$0xff]   ;;  %v1503_v13 = vld [vmem:[#allocation5 + $0x6c] ss:$16 sps:$4 sm:$0xff]  }
  0x3c   :  { %v1505_v14 = vld [vmem:[#allocation5 + $0x60] ss:$16 sps:$4 sm:$0xff]   ;;  %v1506_v15 = vld [vmem:[#allocation5 + $0x68] ss:$16 sps:$4 sm:$0xff]   ;;  %v1507_v16 = vld [vmem:[#allocation5 + $0x84] ss:$16 sps:$4 sm:$0xff]  }
  0x3d   :  { %867 = vmatpush1.bf16.msra.mxu0 %v1493_v6  ;;  %969 = vmatpush1.bf16.msra.mxu1 %v1494_v7  ;;  %v1509_v17 = vld [vmem:[#allocation5 + $0x8c] ss:$16 sps:$4 sm:$0xff]   ;;  %v1511_v18 = vld [vmem:[#allocation5 + $0x80] ss:$16 sps:$4 sm:$0xff]   ;;  %v1512_v19 = vld [vmem:[#allocation5 + $0x88] ss:$16 sps:$4 sm:$0xff]  }
  0x3e   :  { %868 = vmatprep.subr.bf16.mxu0 %v1495_v8  ;;  %970 = vmatprep.subr.bf16.mxu1 %v1497_v9  ;;  %v1513_v20 = vld [vmem:[#allocation5 + $0xa4] ss:$16 sps:$4 sm:$0xff]   ;;  %v1515_v21 = vld [vmem:[#allocation5 + $0xac] ss:$16 sps:$4 sm:$0xff]   ;;  %v1517_v22 = vld [vmem:[#allocation5 + $0xa0] ss:$16 sps:$4 sm:$0xff]  }
  0x3f   :  { %v1518_v23 = vld [vmem:[#allocation5 + $0xa8] ss:$16 sps:$4 sm:$0xff]   ;;  %v1519_v24 = vld [vmem:[#allocation5 + $0xc4] ss:$16 sps:$4 sm:$0xff]   ;;  %v1521_v25 = vld [vmem:[#allocation5 + $0xcc] ss:$16 sps:$4 sm:$0xff]  }
  0x40   :  { %v1523_v26 = vld [vmem:[#allocation5 + $0xc0] ss:$16 sps:$4 sm:$0xff]   ;;  %v1524_v27 = vld [vmem:[#allocation5 + $0xc8] ss:$16 sps:$4 sm:$0xff]   ;;  %v1525_v28 = vld [vmem:[#allocation5 + $0xe4] ss:$16 sps:$4 sm:$0xff]  }
  0x41   :  { %869 = vmatpush1.bf16.msra.mxu0 %v1499_v10  ;;  %971 = vmatpush1.bf16.msra.mxu1 %v1500_v11  ;;  %v1527_v29 = vld [vmem:[#allocation5 + $0xec] ss:$16 sps:$4 sm:$0xff]   ;;  %v1529_v30 = vld [vmem:[#allocation5 + $0xe0] ss:$16 sps:$4 sm:$0xff]   ;;  %v1530_v31 = vld [vmem:[#allocation5 + $0xe8] ss:$16 sps:$4 sm:$0xff]  }
  0x42   :  { %870 = vmatprep.subr.bf16.mxu0 %v1501_v12  ;;  %972 = vmatprep.subr.bf16.mxu1 %v1503_v13  ;;  %v1531_v32 = vld [vmem:[#allocation5 + $0x104] ss:$16 sps:$4 sm:$0xff]   ;;  %v1533_v33 = vld [vmem:[#allocation5 + $0x10c] ss:$16 sps:$4 sm:$0xff]   ;;  %v1535_v34 = vld [vmem:[#allocation5 + $0x100] ss:$16 sps:$4 sm:$0xff]  }
  0x43   :  { %v1536_v35 = vld [vmem:[#allocation5 + $0x108] ss:$16 sps:$4 sm:$0xff]   ;;  %v1537_v36 = vld [vmem:[#allocation5 + $0x124] ss:$16 sps:$4 sm:$0xff]   ;;  %v1539_v37 = vld [vmem:[#allocation5 + $0x12c] ss:$16 sps:$4 sm:$0xff]  }
  0x44   :  { %v1541_v38 = vld [vmem:[#allocation5 + $0x120] ss:$16 sps:$4 sm:$0xff]   ;;  %v1542_v39 = vld [vmem:[#allocation5 + $0x128] ss:$16 sps:$4 sm:$0xff]   ;;  %v1543_v40 = vld [vmem:[#allocation5 + $0x144] ss:$16 sps:$4 sm:$0xff]  }
  0x45   :  { %871 = vmatpush1.bf16.msra.mxu0 %v1505_v14  ;;  %973 = vmatpush1.bf16.msra.mxu1 %v1506_v15  ;;  %v1545_v41 = vld [vmem:[#allocation5 + $0x14c] ss:$16 sps:$4 sm:$0xff]   ;;  %v1547_v42 = vld [vmem:[#allocation5 + $0x140] ss:$16 sps:$4 sm:$0xff]   ;;  %v1548_v43 = vld [vmem:[#allocation5 + $0x148] ss:$16 sps:$4 sm:$0xff]  }
  0x46   :  { %872 = vmatprep.subr.bf16.mxu0 %v1507_v16  ;;  %974 = vmatprep.subr.bf16.mxu1 %v1509_v17  ;;  %v1549_v44 = vld [vmem:[#allocation5 + $0x164] ss:$16 sps:$4 sm:$0xff]   ;;  %v1551_v45 = vld [vmem:[#allocation5 + $0x16c] ss:$16 sps:$4 sm:$0xff]   ;;  %v1553_v46 = vld [vmem:[#allocation5 + $0x160] ss:$16 sps:$4 sm:$0xff]  }
  0x47   :  { %v1554_v47 = vld [vmem:[#allocation5 + $0x168] ss:$16 sps:$4 sm:$0xff]   ;;  %v1581_v48 = vld [vmem:[#allocation2 + $0x4] ss:$16 sps:$4 sm:$0xff]   ;;  %v1557_v50 = vld [vmem:[#allocation5 + $0x18c] ss:$16 sps:$4 sm:$0xff]  }
  0x48   :  { %v1555_v49 = vld [vmem:[#allocation5 + $0x184] ss:$16 sps:$4 sm:$0xff]   ;;  %896 = vmatprep.mubr.bf16.mxu0 %v1581_v48  ;;  %998 = vmatprep.mubr.bf16.mxu1 %v1581_v48  ;;  %v1559_v51 = vld [vmem:[#allocation5 + $0x180] ss:$16 sps:$4 sm:$0xff]   ;;  %v1560_v52 = vld [vmem:[#allocation5 + $0x188] ss:$16 sps:$4 sm:$0xff]  }
  0x49   :  { %873 = vmatpush1.bf16.msra.mxu0 %v1511_v18  ;;  %975 = vmatpush1.bf16.msra.mxu1 %v1512_v19  ;;  %v1561_v53 = vld [vmem:[#allocation5 + $0x1a4] ss:$16 sps:$4 sm:$0xff]   ;;  %v1563_v54 = vld [vmem:[#allocation5 + $0x1ac] ss:$16 sps:$4 sm:$0xff]   ;;  %v1565_v55 = vld [vmem:[#allocation5 + $0x1a0] ss:$16 sps:$4 sm:$0xff]  }
  0x4a   :  { %874 = vmatprep.subr.bf16.mxu0 %v1513_v20  ;;  %976 = vmatprep.subr.bf16.mxu1 %v1515_v21  ;;  %v1566_v56 = vld [vmem:[#allocation5 + $0x1a8] ss:$16 sps:$4 sm:$0xff]   ;;  %v1567_v57 = vld [vmem:[#allocation5 + $0x1c4] ss:$16 sps:$4 sm:$0xff]   ;;  %v1569_v58 = vld [vmem:[#allocation5 + $0x1cc] ss:$16 sps:$4 sm:$0xff]  }
  0x4b   :  { %v1571_v59 = vld [vmem:[#allocation5 + $0x1c0] ss:$16 sps:$4 sm:$0xff]   ;;  %v1572_v60 = vld [vmem:[#allocation5 + $0x1c8] ss:$16 sps:$4 sm:$0xff]   ;;  %v1573_v61 = vld [vmem:[#allocation5 + $0x1e4] ss:$16 sps:$4 sm:$0xff]  }
  0x4c   :  { %v1575_v62 = vld [vmem:[#allocation5 + $0x1ec] ss:$16 sps:$4 sm:$0xff]   ;;  %v1577_v63 = vld [vmem:[#allocation5 + $0x1e0] ss:$16 sps:$4 sm:$0xff]   ;;  %v1578_v0 = vld [vmem:[#allocation5 + $0x1e8] ss:$16 sps:$4 sm:$0xff]  }
  0x4d   :  { %875 = vmatpush1.bf16.msra.mxu0 %v1517_v22  ;;  %977 = vmatpush1.bf16.msra.mxu1 %v1518_v23  ;;  %v1584_v1 = vld [vmem:[#allocation5 + $0x204] ss:$16 sps:$4 sm:$0xff]   ;;  %v1587_v2 = vld [vmem:[#allocation5 + $0x20c] ss:$16 sps:$4 sm:$0xff]   ;;  %v1579_v3 = vld [vmem:[#allocation2] ss:$16 sps:$4 sm:$0xff]  }
  0x4e   :  { %876 = vmatprep.subr.bf16.mxu0 %v1519_v24  ;;  %978 = vmatprep.subr.bf16.mxu1 %v1521_v25  ;;  %v1582_v4 = vld [vmem:[#allocation5 + $0x200] ss:$16 sps:$4 sm:$0xff]   ;;  %v1585_v5 = vld [vmem:[#allocation5 + $0x208] ss:$16 sps:$4 sm:$0xff]   ;;  %v1590_v6 = vld [vmem:[#allocation5 + $0x224] ss:$16 sps:$4 sm:$0xff]  }
  0x4f   :  { %v1593_v7 = vld [vmem:[#allocation5 + $0x22c] ss:$16 sps:$4 sm:$0xff]   ;;  %v1588_v8 = vld [vmem:[#allocation5 + $0x220] ss:$16 sps:$4 sm:$0xff]   ;;  %v1591_v9 = vld [vmem:[#allocation5 + $0x228] ss:$16 sps:$4 sm:$0xff]  }
  0x50   :  { %v1596_v10 = vld [vmem:[#allocation5 + $0x244] ss:$16 sps:$4 sm:$0xff]   ;;  %v1599_v11 = vld [vmem:[#allocation5 + $0x24c] ss:$16 sps:$4 sm:$0xff]   ;;  %v1594_v12 = vld [vmem:[#allocation5 + $0x240] ss:$16 sps:$4 sm:$0xff]  }
  0x51   :  { %877 = vmatpush1.bf16.msra.mxu0 %v1523_v26  ;;  %979 = vmatpush1.bf16.msra.mxu1 %v1524_v27  ;;  %v1597_v13 = vld [vmem:[#allocation5 + $0x248] ss:$16 sps:$4 sm:$0xff]   ;;  %v1602_v14 = vld [vmem:[#allocation5 + $0x264] ss:$16 sps:$4 sm:$0xff]   ;;  %v1605_v15 = vld [vmem:[#allocation5 + $0x26c] ss:$16 sps:$4 sm:$0xff]  }
  0x52   :  { %878 = vmatprep.subr.bf16.mxu0 %v1525_v28  ;;  %980 = vmatprep.subr.bf16.mxu1 %v1527_v29  ;;  %v1600_v16 = vld [vmem:[#allocation5 + $0x260] ss:$16 sps:$4 sm:$0xff]   ;;  %v1603_v17 = vld [vmem:[#allocation5 + $0x268] ss:$16 sps:$4 sm:$0xff]   ;;  %v1608_v18 = vld [vmem:[#allocation5 + $0x284] ss:$16 sps:$4 sm:$0xff]  }
  0x53   :  { %v1611_v19 = vld [vmem:[#allocation5 + $0x28c] ss:$16 sps:$4 sm:$0xff]   ;;  %v1606_v20 = vld [vmem:[#allocation5 + $0x280] ss:$16 sps:$4 sm:$0xff]   ;;  %v1609_v21 = vld [vmem:[#allocation5 + $0x288] ss:$16 sps:$4 sm:$0xff]  }
  0x54   :  { %v1614_v22 = vld [vmem:[#allocation5 + $0x2a4] ss:$16 sps:$4 sm:$0xff]   ;;  %v1617_v23 = vld [vmem:[#allocation5 + $0x2ac] ss:$16 sps:$4 sm:$0xff]   ;;  %v1612_v26 = vld [vmem:[#allocation5 + $0x2a0] ss:$16 sps:$4 sm:$0xff]  }
  0x55   :  { %879 = vmatpush1.bf16.msra.mxu0 %v1529_v30  ;;  %981 = vmatpush1.bf16.msra.mxu1 %v1530_v31  ;;  %v60_v24 = vld [vmem:[#allocation2 + $0x20] sm:$0xff]  ;;  %v1615_v28 = vld [vmem:[#allocation5 + $0x2a8] ss:$16 sps:$4 sm:$0xff]   ;;  %v1623_v30 = vld [vmem:[#allocation5 + $0x2cc] ss:$16 sps:$4 sm:$0xff]   ;;  %s1792_s2 = smov [#allocation8]  }
  0x56   :  { %880 = vmatprep.subr.bf16.mxu0 %v1531_v32  ;;  %982 = vmatprep.subr.bf16.mxu1 %v1533_v33  ;;  %v1239_v25 = vcombine.high %v60_v24, %v60_v24  ;;  %v1238_v27 = vcombine.low %v60_v24, %v60_v24  ;;  %v1620_v29 = vld [vmem:[#allocation5 + $0x2c4] ss:$16 sps:$4 sm:$0xff]   ;;  %v1618_v31 = vld [vmem:[#allocation5 + $0x2c0] ss:$16 sps:$4 sm:$0xff]   ;;  %v1621_v32 = vld [vmem:[#allocation5 + $0x2c8] ss:$16 sps:$4 sm:$0xff]  }
  0x57   :  { %v1682_v33 = vld [vmem:[#allocation2 + $0xc] ss:$16 sps:$4 sm:$0xff]   ;;  %v1642_v48 = vld [vmem:[#allocation5 + $0x340] ss:$16 sps:$4 sm:$0xff]   ;;  %s1221_s23 = sshll.u32 %s1792_s2, 4  ;;  %s1222_s23 = int_to_ptr.vmem [resolvable:$true] %s1221_s23 }
  0x58   :  { %v1090_v24 = vld [vmem:[#allocation7 + $0x20] sm:$0xff]  ;;  %s1757_s24 = scalar_lea.vmem %s1222_s23, 384  ;;  %p1762_p11 = scmp.lt.s32.totalorder %s1222_s23, %s1222_s23 }
  0x59   :  { %881 = vmatpush1.bf16.msra.mxu0 %v1535_v34  ;;  %983 = vmatpush1.bf16.msra.mxu1 %v1536_v35  ;;  %v1626_v34 = vld [vmem:[#allocation5 + $0x2e4] ss:$16 sps:$4 sm:$0xff]   ;;  %v1629_v35 = vld [vmem:[#allocation5 + $0x2ec] ss:$16 sps:$4 sm:$0xff]   ;;  %p1758_p10 = scmp.ne.s32.totalorder %s1222_s23, %s1757_s24  ;;  %p1763_p12 = scmp.lt.s32.totalorder %s1757_s24, %s1757_s24 }
  0x5a   :  { %882 = vmatprep.subr.bf16.mxu0 %v1537_v36  ;;  %984 = vmatprep.subr.bf16.mxu1 %v1539_v37  ;;  %v1624_v36 = vld [vmem:[#allocation5 + $0x2e0] ss:$16 sps:$4 sm:$0xff]   ;;  %v1627_v37 = vld [vmem:[#allocation5 + $0x2e8] ss:$16 sps:$4 sm:$0xff]  }
  0x5b   :  { %p1764_p13 = por %p1763_p12, %p1762_p11 }
  0x5d   :  { %883 = vmatpush1.bf16.msra.mxu0 %v1541_v38  ;;  %985 = vmatpush1.bf16.msra.mxu1 %v1542_v39  ;;  %v1632_v38 = vld [vmem:[#allocation5 + $0x304] ss:$16 sps:$4 sm:$0xff]   ;;  %v1635_v39 = vld [vmem:[#allocation5 + $0x30c] ss:$16 sps:$4 sm:$0xff]   ;;  %p1765_p0 = pnand %p1764_p13, %p1758_p10 }
  0x5e   :  { %884 = vmatprep.subr.bf16.mxu0 %v1543_v40  ;;  %986 = vmatprep.subr.bf16.mxu1 %v1545_v41  ;;  %v1630_v40 = vld [vmem:[#allocation5 + $0x300] ss:$16 sps:$4 sm:$0xff]   ;;  %v1633_v41 = vld [vmem:[#allocation5 + $0x308] ss:$16 sps:$4 sm:$0xff]  }
  0x61   :  { %885 = vmatpush1.bf16.msra.mxu0 %v1547_v42  ;;  %987 = vmatpush1.bf16.msra.mxu1 %v1548_v43  ;;  %v1638_v42 = vld [vmem:[#allocation5 + $0x324] ss:$16 sps:$4 sm:$0xff]   ;;  %v1641_v43 = vld [vmem:[#allocation5 + $0x32c] ss:$16 sps:$4 sm:$0xff]  }
  0x62   :  { %886 = vmatprep.subr.bf16.mxu0 %v1549_v44  ;;  %988 = vmatprep.subr.bf16.mxu1 %v1551_v45  ;;  %v1636_v44 = vld [vmem:[#allocation5 + $0x320] ss:$16 sps:$4 sm:$0xff]   ;;  %v1639_v45 = vld [vmem:[#allocation5 + $0x328] ss:$16 sps:$4 sm:$0xff]  }
  0x65   :  { %887 = vmatpush1.bf16.msra.mxu0 %v1553_v46  ;;  %989 = vmatpush1.bf16.msra.mxu1 %v1554_v47  ;;  %v1644_v46 = vld [vmem:[#allocation5 + $0x344] ss:$16 sps:$4 sm:$0xff]   ;;  %v1647_v47 = vld [vmem:[#allocation5 + $0x34c] ss:$16 sps:$4 sm:$0xff]  }
  0x66   :  { %888 = vmatprep.subr.bf16.mxu0 %v1555_v49  ;;  %990 = vmatprep.subr.bf16.mxu1 %v1557_v50  ;;  %v1645_v49 = vld [vmem:[#allocation5 + $0x348] ss:$16 sps:$4 sm:$0xff]   ;;  %v1650_v50 = vld [vmem:[#allocation5 + $0x364] ss:$16 sps:$4 sm:$0xff]  }
  0x69   :  { %889 = vmatpush1.bf16.msra.mxu0 %v1559_v51  ;;  %991 = vmatpush1.bf16.msra.mxu1 %v1560_v52  ;;  %v1653_v51 = vld [vmem:[#allocation5 + $0x36c] ss:$16 sps:$4 sm:$0xff]   ;;  %v1648_v52 = vld [vmem:[#allocation5 + $0x360] ss:$16 sps:$4 sm:$0xff]  }
  0x6a   :  { %890 = vmatprep.subr.bf16.mxu0 %v1561_v53  ;;  %992 = vmatprep.subr.bf16.mxu1 %v1563_v54  ;;  %v1651_v53 = vld [vmem:[#allocation5 + $0x368] ss:$16 sps:$4 sm:$0xff]   ;;  %v1656_v54 = vld [vmem:[#allocation5 + $0x384] ss:$16 sps:$4 sm:$0xff]  }
  0x6d   :  { %891 = vmatpush1.bf16.msra.mxu0 %v1565_v55  ;;  %993 = vmatpush1.bf16.msra.mxu1 %v1566_v56  ;;  %v1659_v55 = vld [vmem:[#allocation5 + $0x38c] ss:$16 sps:$4 sm:$0xff]   ;;  %v1654_v56 = vld [vmem:[#allocation5 + $0x380] ss:$16 sps:$4 sm:$0xff]  }
  0x6e   :  { %892 = vmatprep.subr.bf16.mxu0 %v1567_v57  ;;  %994 = vmatprep.subr.bf16.mxu1 %v1569_v58  ;;  %v1657_v57 = vld [vmem:[#allocation5 + $0x388] ss:$16 sps:$4 sm:$0xff]   ;;  %v1662_v58 = vld [vmem:[#allocation5 + $0x3a4] ss:$16 sps:$4 sm:$0xff]  }
  0x71   :  { %893 = vmatpush1.bf16.msra.mxu0 %v1571_v59  ;;  %995 = vmatpush1.bf16.msra.mxu1 %v1572_v60  ;;  %v1665_v59 = vld [vmem:[#allocation5 + $0x3ac] ss:$16 sps:$4 sm:$0xff]   ;;  %v1660_v60 = vld [vmem:[#allocation5 + $0x3a0] ss:$16 sps:$4 sm:$0xff]  }
  0x72   :  { %894 = vmatprep.subr.bf16.mxu0 %v1573_v61  ;;  %996 = vmatprep.subr.bf16.mxu1 %v1575_v62  ;;  %v1663_v61 = vld [vmem:[#allocation5 + $0x3a8] ss:$16 sps:$4 sm:$0xff]   ;;  %v1670_v62 = vld [vmem:[#allocation5 + $0x3c4] ss:$16 sps:$4 sm:$0xff]  }
  0x75   :  { %895 = vmatpush1.bf16.msra.mxu0 %v1577_v63  ;;  %997 = vmatpush1.bf16.msra.mxu1 %v1578_v0  ;;  %v1673_v63 = vld [vmem:[#allocation5 + $0x3cc] ss:$16 sps:$4 sm:$0xff]   ;;  %v1668_v0 = vld [vmem:[#allocation5 + $0x3c0] ss:$16 sps:$4 sm:$0xff]  }
  0x76   :  { %915 = vmatprep.subr.bf16.mxu0 %v1584_v1  ;;  %1017 = vmatprep.subr.bf16.mxu1 %v1587_v2  ;;  %v1671_v1 = vld [vmem:[#allocation5 + $0x3c8] ss:$16 sps:$4 sm:$0xff]   ;;  %v1676_v2 = vld [vmem:[#allocation5 + $0x3e4] ss:$16 sps:$4 sm:$0xff]  }
  0x78   :  { %897 = vmatmul.mubr.bf16.vlgmr.msra.gmra.mrb[0].mxu0 %v1579_v3  ;;  %999 = vmatmul.mubr.bf16.vlgmr.msra.gmra.mrb[0].mxu1 %v1579_v3  ;;  %v1679_v3 = vld [vmem:[#allocation5 + $0x3ec] ss:$16 sps:$4 sm:$0xff]  }
  0x79   :  { %916 = vmatpush1.bf16.msra.mxu0 %v1582_v4  ;;  %1018 = vmatpush1.bf16.msra.mxu1 %v1585_v5  ;;  %v1102_v4 = vld [vmem:[#allocation7 + $0x80] sm:$0xff]  ;;  %v1103_v5 = vld [vmem:[#allocation7 + $0x88] sm:$0xff] }
  0x7a   :  { %917 = vmatprep.subr.bf16.mxu0 %v1590_v6  ;;  %1019 = vmatprep.subr.bf16.mxu1 %v1593_v7  ;;  %v1674_v6 = vld [vmem:[#allocation5 + $0x3e0] ss:$16 sps:$4 sm:$0xff]   ;;  %v1677_v7 = vld [vmem:[#allocation5 + $0x3e8] ss:$16 sps:$4 sm:$0xff]  }
  0x7b   :  { %906 = vmatprep.mubr.bf16.mxu0 %v1239_v25  ;;  %1008 = vmatprep.mubr.bf16.mxu1 %v1239_v25  ;;  %v1091_v25 = vld [vmem:[#allocation7 + $0x28] sm:$0xff] }
  0x7d   :  { %918 = vmatpush1.bf16.msra.mxu0 %v1588_v8  ;;  %1020 = vmatpush1.bf16.msra.mxu1 %v1591_v9  ;;  %v61_v8 = vld [vmem:[#allocation2 + $0x28] sm:$0xff]  ;;  %v1411_v9 = vpack.c.bf16 %v1103_v5, %v1102_v4 }
  0x7e   :  { %919 = vmatprep.subr.bf16.mxu0 %v1596_v10  ;;  %1021 = vmatprep.subr.bf16.mxu1 %v1599_v11  ;;  %v1086_v10 = vld [vmem:[#allocation7] sm:$0xff]  ;;  %v1087_v11 = vld [vmem:[#allocation7 + $0x8] sm:$0xff] }
  0x80   :  { %907 = vmatmul.mubr.bf16.gmra.mrb[4].mxu0 %v1238_v27  ;;  %1009 = vmatmul.mubr.bf16.gmra.mrb[4].mxu1 %v1238_v27  ;;  %v1108_v27 = vld [vmem:[#allocation7 + $0xb0] sm:$0xff] }
  0x81   :  { %920 = vmatpush1.bf16.msra.mxu0 %v1594_v12  ;;  %1022 = vmatpush1.bf16.msra.mxu1 %v1597_v13  ;;  %v1680_v12 = vld [vmem:[#allocation2 + $0x8] ss:$16 sps:$4 sm:$0xff]   ;;  %v1104_v13 = vld [vmem:[#allocation7 + $0x90] sm:$0xff] }
  0x82   :  { %921 = vmatprep.subr.bf16.mxu0 %v1602_v14  ;;  %1023 = vmatprep.subr.bf16.mxu1 %v1605_v15  ;;  %v1105_v14 = vld [vmem:[#allocation7 + $0x98] sm:$0xff]  ;;  %v1241_v15 = vcombine.high %v61_v8, %v61_v8 }
  0x83   :  { %947 = vmatprep.mubr.bf16.mxu0 %v1682_v33  ;;  %1049 = vmatprep.mubr.bf16.mxu1 %v1682_v33  ;;  %v1110_v33 = vld [vmem:[#allocation7 + $0xc0] sm:$0xff] }
  0x85   :  { %922 = vmatpush1.bf16.msra.mxu0 %v1600_v16  ;;  %1024 = vmatpush1.bf16.msra.mxu1 %v1603_v17  ;;  %v1413_v16 = vpack.c.bf16 %v1087_v11, %v1086_v10  ;;  %v1415_v17 = vpack.c.bf16 %v1105_v14, %v1104_v13 }
  0x86   :  { %923 = vmatprep.subr.bf16.mxu0 %v1608_v18  ;;  %1025 = vmatprep.subr.bf16.mxu1 %v1611_v19  ;;  %v1088_v18 = vld [vmem:[#allocation7 + $0x10] sm:$0xff]  ;;  %v1089_v19 = vld [vmem:[#allocation7 + $0x18] sm:$0xff] }
  0x89   :  { %924 = vmatpush1.bf16.msra.mxu0 %v1606_v20  ;;  %1026 = vmatpush1.bf16.msra.mxu1 %v1609_v21  ;;  %v1106_v20 = vld [vmem:[#allocation7 + $0xa0] sm:$0xff]  ;;  %v1107_v21 = vld [vmem:[#allocation7 + $0xa8] sm:$0xff] }
  0x8a   :  { %925 = vmatprep.subr.bf16.mxu0 %v1614_v22  ;;  %1027 = vmatprep.subr.bf16.mxu1 %v1617_v23  ;;  %v1417_v22 = vpack.c.bf16 %v1089_v19, %v1088_v18  ;;  %v1419_v23 = vpack.c.bf16 %v1107_v21, %v1106_v20 }
  0x8d   :  { %926 = vmatpush1.bf16.msra.mxu0 %v1612_v26  ;;  %1028 = vmatpush1.bf16.msra.mxu1 %v1615_v28  ;;  %v1240_v26 = vcombine.low %v61_v8, %v61_v8  ;;  %v1109_v28 = vld [vmem:[#allocation7 + $0xb8] sm:$0xff] }
  0x8e   :  { %927 = vmatprep.subr.bf16.mxu0 %v1620_v29  ;;  %1029 = vmatprep.subr.bf16.mxu1 %v1623_v30  ;;  %v1421_v29 = vpack.c.bf16 %v1091_v25, %v1090_v24  ;;  %v1423_v30 = vpack.c.bf16 %v1109_v28, %v1108_v27 }
  0x91   :  { %928 = vmatpush1.bf16.msra.mxu0 %v1618_v31  ;;  %1030 = vmatpush1.bf16.msra.mxu1 %v1621_v32  ;;  %v1092_v31 = vld [vmem:[#allocation7 + $0x30] sm:$0xff]  ;;  %v1093_v32 = vld [vmem:[#allocation7 + $0x38] sm:$0xff] }
  0x92   :  { %929 = vmatprep.subr.bf16.mxu0 %v1626_v34  ;;  %1031 = vmatprep.subr.bf16.mxu1 %v1629_v35  ;;  %v1111_v34 = vld [vmem:[#allocation7 + $0xc8] sm:$0xff]  ;;  %v1425_v35 = vpack.c.bf16 %v1093_v32, %v1092_v31 }
  0x95   :  { %930 = vmatpush1.bf16.msra.mxu0 %v1624_v36  ;;  %1032 = vmatpush1.bf16.msra.mxu1 %v1627_v37  ;;  %v1427_v36 = vpack.c.bf16 %v1111_v34, %v1110_v33  ;;  %v1094_v37 = vld [vmem:[#allocation7 + $0x40] sm:$0xff] }
  0x96   :  { %931 = vmatprep.subr.bf16.mxu0 %v1632_v38  ;;  %1033 = vmatprep.subr.bf16.mxu1 %v1635_v39  ;;  %v1095_v38 = vld [vmem:[#allocation7 + $0x48] sm:$0xff]  ;;  %v1112_v39 = vld [vmem:[#allocation7 + $0xd0] sm:$0xff] }
  0x99   :  { %932 = vmatpush1.bf16.msra.mxu0 %v1630_v40  ;;  %1034 = vmatpush1.bf16.msra.mxu1 %v1633_v41  ;;  %v1113_v40 = vld [vmem:[#allocation7 + $0xd8] sm:$0xff]  ;;  %v1429_v41 = vpack.c.bf16 %v1095_v38, %v1094_v37 }
  0x9a   :  { %933 = vmatprep.subr.bf16.mxu0 %v1638_v42  ;;  %1035 = vmatprep.subr.bf16.mxu1 %v1641_v43  ;;  %v1431_v42 = vpack.c.bf16 %v1113_v40, %v1112_v39  ;;  %v1096_v43 = vld [vmem:[#allocation7 + $0x50] sm:$0xff] }
  0x9d   :  { %934 = vmatpush1.bf16.msra.mxu0 %v1636_v44  ;;  %1036 = vmatpush1.bf16.msra.mxu1 %v1639_v45  ;;  %v1097_v44 = vld [vmem:[#allocation7 + $0x58] sm:$0xff]  ;;  %v1114_v45 = vld [vmem:[#allocation7 + $0xe0] sm:$0xff] }
  0x9e   :  { %935 = vmatprep.subr.bf16.mxu0 %v1644_v46  ;;  %1037 = vmatprep.subr.bf16.mxu1 %v1647_v47  ;;  %v1115_v46 = vld [vmem:[#allocation7 + $0xe8] sm:$0xff]  ;;  %v1433_v47 = vpack.c.bf16 %v1097_v44, %v1096_v43 }
  0xa1   :  { %936 = vmatpush1.bf16.msra.mxu0 %v1642_v48  ;;  %1038 = vmatpush1.bf16.msra.mxu1 %v1645_v49  ;;  %v1435_v48 = vpack.c.bf16 %v1115_v46, %v1114_v45  ;;  %v1098_v49 = vld [vmem:[#allocation7 + $0x60] sm:$0xff] }
  0xa2   :  { %937 = vmatprep.subr.bf16.mxu0 %v1650_v50  ;;  %1039 = vmatprep.subr.bf16.mxu1 %v1653_v51  ;;  %v1099_v50 = vld [vmem:[#allocation7 + $0x68] sm:$0xff] }
  0xa3   :  { %v1437_v51 = vpack.c.bf16 %v1099_v50, %v1098_v49 }
  0xa5   :  { %938 = vmatpush1.bf16.msra.mxu0 %v1648_v52  ;;  %1040 = vmatpush1.bf16.msra.mxu1 %v1651_v53  ;;  %v1116_v52 = vld [vmem:[#allocation7 + $0xf0] sm:$0xff]  ;;  %v1117_v53 = vld [vmem:[#allocation7 + $0xf8] sm:$0xff] }
  0xa6   :  { %939 = vmatprep.subr.bf16.mxu0 %v1656_v54  ;;  %1041 = vmatprep.subr.bf16.mxu1 %v1659_v55  ;;  %v1439_v54 = vpack.c.bf16 %v1117_v53, %v1116_v52  ;;  %v1100_v55 = vld [vmem:[#allocation7 + $0x70] sm:$0xff] }
  0xa9   :  { %940 = vmatpush1.bf16.msra.mxu0 %v1654_v56  ;;  %1042 = vmatpush1.bf16.msra.mxu1 %v1657_v57  ;;  %v1101_v56 = vld [vmem:[#allocation7 + $0x78] sm:$0xff] }
  0xaa   :  { %941 = vmatprep.subr.bf16.mxu0 %v1662_v58  ;;  %1043 = vmatprep.subr.bf16.mxu1 %v1665_v59  ;;  %v1441_v57 = vpack.c.bf16 %v1101_v56, %v1100_v55 }
  0xad   :  { %942 = vmatpush1.bf16.msra.mxu0 %v1660_v60  ;;  %1044 = vmatpush1.bf16.msra.mxu1 %v1663_v61 }
  0xae   :  { %943 = vmatprep.subr.bf16.mxu0 %v1670_v62  ;;  %1045 = vmatprep.subr.bf16.mxu1 %v1673_v63 }
  0xb1   :  { %944 = vmatpush1.bf16.msra.mxu0 %v1668_v0  ;;  %1046 = vmatpush1.bf16.msra.mxu1 %v1671_v1 }
  0xb2   :  { %945 = vmatprep.subr.bf16.mxu0 %v1676_v2  ;;  %1047 = vmatprep.subr.bf16.mxu1 %v1679_v3 }
  0xb5   :  { %946 = vmatpush1.bf16.msra.mxu0 %v1674_v6  ;;  %1048 = vmatpush1.bf16.msra.mxu1 %v1677_v7 }
  0xb6   :  { %1412 = vmatprep.subr.bf16.mxu0 %v1411_v9  ;;  %1443 = vmatprep.subr.bf16.mxu1 %v1411_v9 }
  0xb8   :  { %948 = vmatmul.mubr.bf16.vlgmr.msra.gmra.mrb[0].mxu0 %v1680_v12  ;;  %1050 = vmatmul.mubr.bf16.vlgmr.msra.gmra.mrb[0].mxu1 %v1680_v12 }
  0xb9   :  { %957 = vmatprep.mubr.bf16.mxu0 %v1241_v15  ;;  %1059 = vmatprep.mubr.bf16.mxu1 %v1241_v15 }
  0xba   :  { %1414 = vmatpush3.bf16.msra.mxu0 %v1413_v16  ;;  %1451 = vmatpush3.bf16.msra.mxu1 %v1413_v16 }
  0xbb   :  { %1416 = vmatprep.subr.bf16.mxu0 %v1415_v17  ;;  %1444 = vmatprep.subr.bf16.mxu1 %v1415_v17 }
  0xbe   :  { %1418 = vmatpush3.bf16.msra.mxu0 %v1417_v22  ;;  %1452 = vmatpush3.bf16.msra.mxu1 %v1417_v22 }
  0xbf   :  { %1420 = vmatprep.subr.bf16.mxu0 %v1419_v23  ;;  %1445 = vmatprep.subr.bf16.mxu1 %v1419_v23 }
  0xc0   :  { %958 = vmatmul.mubr.bf16.gmra.mrb[4].mxu0 %v1240_v26  ;;  %1060 = vmatmul.mubr.bf16.gmra.mrb[4].mxu1 %v1240_v26 }
  0xc2   :  { %1422 = vmatpush3.bf16.msra.mxu0 %v1421_v29  ;;  %1453 = vmatpush3.bf16.msra.mxu1 %v1421_v29 }
  0xc3   :  { %1424 = vmatprep.subr.bf16.mxu0 %v1423_v30  ;;  %1446 = vmatprep.subr.bf16.mxu1 %v1423_v30 }
  0xc6   :  { %1426 = vmatpush3.bf16.msra.mxu0 %v1425_v35  ;;  %1454 = vmatpush3.bf16.msra.mxu1 %v1425_v35 }
  0xc7   :  { %1428 = vmatprep.subr.bf16.mxu0 %v1427_v36  ;;  %1447 = vmatprep.subr.bf16.mxu1 %v1427_v36 }
  0xca   :  { %1430 = vmatpush3.bf16.msra.mxu0 %v1429_v41  ;;  %1455 = vmatpush3.bf16.msra.mxu1 %v1429_v41 }
  0xcb   :  { %1432 = vmatprep.subr.bf16.mxu0 %v1431_v42  ;;  %1448 = vmatprep.subr.bf16.mxu1 %v1431_v42 }
  0xce   :  { %1434 = vmatpush3.bf16.msra.mxu0 %v1433_v47  ;;  %1456 = vmatpush3.bf16.msra.mxu1 %v1433_v47 }
  0xcf   :  { %1436 = vmatprep.subr.bf16.mxu0 %v1435_v48  ;;  %1449 = vmatprep.subr.bf16.mxu1 %v1435_v48 }
  0xd2   :  { %1438 = vmatpush3.bf16.msra.mxu0 %v1437_v51  ;;  %1457 = vmatpush3.bf16.msra.mxu1 %v1437_v51 }
  0xd3   :  { %1440 = vmatprep.subr.bf16.mxu0 %v1439_v54  ;;  %1450 = vmatprep.subr.bf16.mxu1 %v1439_v54 }
  0xd6   :  { %1442 = vmatpush3.bf16.msra.mxu0 %v1441_v57  ;;  %1458 = vmatpush3.bf16.msra.mxu1 %v1441_v57 }
 0x18b   :  { %v949_v58 = vpop.f32.mrb[0].mxu0  ;;  %v1051_v59 = vpop.f32.mrb[0].mxu1 }
 0x18c   :  { %v1068_v60 = vmul.f32 %v949_v58, %v949_v58  ;;  %v1074_v61 = vmul.f32 %v1051_v59, %v1051_v59  ;;  %v951_v62 = vpop.f32.mrb[1].mxu0  ;;  %v1053_v63 = vpop.f32.mrb[1].mxu1 }
 0x18d   :  { %v1069_v0 = vmul.f32 %v951_v62, %v951_v62  ;;  %v1075_v1 = vmul.f32 %v1053_v63, %v1053_v63  ;;  %v953_v2 = vpop.f32.mrb[2].mxu0  ;;  %v1055_v3 = vpop.f32.mrb[2].mxu1 }
 0x18e   :  { %v1080_v4 = vadd.f32 %v1074_v61, %v1068_v60  ;;  %v1070_v5 = vmul.f32 %v953_v2, %v953_v2  ;;  %v1076_v6 = vmul.f32 %v1055_v3, %v1055_v3  ;;  %v955_v7 = vpop.f32.mrb[3].mxu0  ;;  %v1057_v8 = vpop.f32.mrb[3].mxu1 }
 0x18f   :  { %v1081_v9 = vadd.f32 %v1075_v1, %v1069_v0  ;;  %v1071_v10 = vmul.f32 %v955_v7, %v955_v7  ;;  %v1077_v11 = vmul.f32 %v1057_v8, %v1057_v8 }
 0x190   :  { %v1082_v12 = vadd.f32 %v1076_v6, %v1070_v5 }
 0x191   :  { %v1083_v13 = vadd.f32 %v1077_v11, %v1071_v10  ;;  %1182 = vmatprep.mubr.f32.mxu0 %v1081_v9 }
 0x192   :  { %1183 = vmatmul.mubr.f32.vlgmr.msra.gmra.mrb[8].mxu0 %v1080_v4 }
 0x193   :  { %v959_v14 = vpop.f32.mrb[4].mxu0  ;;  %v1061_v15 = vpop.f32.mrb[4].mxu1  ;;  %1187 = vmatprep.mubr.f32.mxu1 %v1083_v13 }
 0x194   :  { %v1072_v16 = vmul.f32 %v959_v14, %v959_v14  ;;  %v1078_v17 = vmul.f32 %v1061_v15, %v1061_v15  ;;  %v961_v18 = vpop.f32.mrb[5].mxu0  ;;  %v1063_v19 = vpop.f32.mrb[5].mxu1  ;;  %1188 = vmatmul.mubr.f32.vlgmr.msra.gmra.mrb[8].mxu1 %v1082_v12 }
 0x195   :  { %v1073_v20 = vmul.f32 %v961_v18, %v961_v18  ;;  %v1079_v21 = vmul.f32 %v1063_v19, %v1063_v19  ;;  %v963_v22 = vpop.f32.mrb[6].mxu0  ;;  %v1065_v23 = vpop.f32.mrb[6].mxu1 }
 0x196   :  { %v1084_v24 = vadd.f32 %v1078_v17, %v1072_v16  ;;  %v964_v25 = vpop.f32.mrb[7].mxu0  ;;  %v1066_v26 = vpop.f32.mrb[7].mxu1 }
 0x197   :  { %v1085_v27 = vadd.f32 %v1079_v21, %v1073_v20 }
 0x199   :  { %1192 = vmatprep.mubr.f32.mxu1 %v1085_v27 }
 0x19a   :  { %1193 = vmatmul.mubr.f32.gmra.mrb[10].mxu1 %v1084_v24 }
 0x265   :  { %v1402_v28 = vpop.f32.mrb[8].mxu0 }
 0x266   :  { %v1403_v29 = vpop.f32.mrb[9].mxu0 }
 0x267   :  { %v1404_v30 = vadd.f32 %v1403_v29, %v1402_v28  ;;  %v1405_v31 = vpop.f32.mrb[8].mxu1 }
 0x268   :  { %v1406_v32 = vpop.f32.mrb[9].mxu1 }
 0x269   :  { %v1198_v33 = vmax.f32 %v1404_v30, 1e-10  ;;  %v1407_v34 = vadd.f32 %v1406_v32, %v1405_v31 }
 0x26b   :  { %1685 = vlog2.f32 %v1198_v33  ;;  %v1199_v35 = vmax.f32 %v1407_v34, 1e-10 }
 0x26d   :  { %1687 = vlog2.f32 %v1199_v35  ;;  %v1408_v36 = vpop.f32.mrb[10].mxu1 }
 0x26e   :  { %v1409_v37 = vpop.f32.mrb[11].mxu1 }
 0x26f   :  { %v1410_v38 = vadd.f32 %v1409_v37, %v1408_v36 }
 0x271   :  { %v1200_v39 = vmax.f32 %v1410_v38, 1e-10 }
 0x273   :  { %1689 = vlog2.f32 %v1200_v39 }
 0x275   :  { %v1686_v40 = vpop.eup %1685 }
 0x276   :  { %v1202_v41 = vmul.f32 0.6931472, %v1686_v40 }
 0x277   :  { %v1688_v42 = vpop.eup %1687 }
 0x278   :  { %v1207_v43 = vmul.f32 0.4342945, %v1202_v41  ;;  %v1204_v44 = vmul.f32 0.6931472, %v1688_v42 }
 0x27a   :  { %v1210_v45 = vmul.f32 10.0, %v1207_v43  ;;  %v1208_v46 = vmul.f32 0.4342945, %v1204_v44 }
 0x27c   :  { %1213 = vst [vmem:[#allocation8] sm:$0xff] %v1210_v45  ;;  %v1211_v47 = vmul.f32 10.0, %v1208_v46 }
 0x27d   :  { %v1690_v48 = vpop.eup %1689 }
 0x27e   :  { %1214 = vst [vmem:[#allocation8 + $0x8] sm:$0xff] %v1211_v47  ;;  %v1206_v49 = vmul.f32 0.6931472, %v1690_v48 }
 0x280   :  { %v1209_v50 = vmul.f32 0.4342945, %v1206_v49 }
 0x282   :  { %v1212_v51 = vmul.f32 10.0, %v1209_v50 }
 0x284   :  { %1215 = vst [vmem:[#allocation8 + $0x10] sm:$0xff] %v1212_v51 }
 0x285   :  { %1768 = shalt.err (!%p1765_p0)
}
 0x286   :  { %s1769_s27 = scalar_lea.hbm %s1877_s3, 384 }
 0x287   :  { %p1770_p1 = scmp.ne.s32.totalorder %s1877_s3, %s1769_s27  ;;  %p1773_p2 = scmp.lt.u32.totalorder %s1769_s27, %s1877_s3 }
 0x289   :  { %p1775_p3 = pnand %p1773_p2, %p1770_p1 }
 0x28b   :  { %1778 = shalt.err (!%p1775_p3)
}
 0x28c   :  { %1227 = dma.vmem_to_hbm [thread:$0]  %s1222_s23, 384, %s1877_s3, [#allocation4], %s1790_s0, %s1790_s0, %s1791_s15  }
 0x28d   :  { %1783 = dma.done.wait [#allocation4], 384  }
 0x28e   :  { %1784 = vsyncadd [#allocation4], 4294966912 }
 0x28f   :  { %1231 = vsyncpa [#allocation3], 1 }
 0x290   :  { %1232 = vsyncpa [#allocation6], 1 }
 0x291   :  { %1233 = vsyncpa [#allocation4], 1 }

</bundles_post_ra>
